<compile_context>
chip_gen: v7x
topology: tpu7x:2x2x1
jax: 0.10.0
libtpu: 0.0.40
codegen_flags: <defaults>
</compile_context>

<pallas_src>
import numpy as np
import jax
import jax.numpy as jnp
from jax import lax
from jax.experimental import pallas as pl
from jax.experimental.pallas import tpu as pltpu

# ---------------------------------------------------------------------------
# constants from the PyTorch module
# ---------------------------------------------------------------------------
N_COORDS = 21                      # torch.linspace(-0.8, 0.8, 21)
POS_BOUND = 0.8
INIT_DENSITY = 0.1
OUT_DIM = 14                       # 3 + 1 + 3 + 4 + 3

_CQ = np.array([
    [1, 0, 0, 0], [0, 1, 0, 0], [0, 0, 1, 0], [0, 0, 0, 1],
    [-1, 0, 0, 0], [0, -1, 0, 0], [0, 0, -1, 0], [0, 0, 0, -1],
    [0.7071, 0.7071, 0.0, 0.0], [0.7071, 0.0, 0.7071, 0.0],
    [0.7071, 0.0, 0.0, 0.7071], [0.0, 0.7071, 0.7071, 0.0],
    [0.0, 0.7071, 0.0, 0.7071], [0.0, 0.0, 0.7071, 0.7071],
    [0.7071, -0.7071, 0.0, 0.0], [0.7071, 0.0, -0.7071, 0.0],
    [0.7071, 0.0, 0.0, -0.7071], [0.0, 0.7071, -0.7071, 0.0],
    [0.0, 0.7071, 0.0, -0.7071], [0.0, 0.0, 0.7071, -0.7071],
    [-0.7071, 0.7071, 0.0, 0.0], [-0.7071, 0.0, 0.7071, 0.0],
    [-0.7071, 0.0, 0.0, 0.7071], [0.0, -0.7071, 0.7071, 0.0],
    [0.0, -0.7071, 0.0, 0.7071], [0.0, 0.0, -0.7071, 0.7071],
    [-0.7071, -0.7071, 0.0, 0.0], [-0.7071, 0.0, -0.7071, 0.0],
    [-0.7071, 0.0, 0.0, -0.7071], [0.0, -0.7071, -0.7071, 0.0],
    [0.0, -0.7071, 0.0, -0.7071], [0.0, 0.0, -0.7071, -0.7071],
], dtype=np.float32)               # (32, 4)

# packed / padded gs-head layout (128 lanes)
HEAD_PAD = 128
XYZ_OFF, XYZ_W = 0, 63             # + 1 pad column at 63 (bias -1e9, weight 0)
ROT_OFF, ROT_W = 64, 32
OP_OFF = 96
SC_OFF = 97
RGB_OFF = 100                      # 100..102, pad 103..127
OUT_PAD = 128                      # lane-dense output store, sliced to 14 outside
RED_W = 16                         # combined epilogue reduction matrix width


def _combined_reduction_matrix():
    """(128, 16): cols 0..2 xyz softmax numerators, 3..5 denominators, 6..9 quats."""
    R = np.zeros((HEAD_PAD, RED_W), dtype=np.float32)
    coords = np.linspace(-POS_BOUND, POS_BOUND, N_COORDS, dtype=np.float32)
    for g in range(3):
        lo = XYZ_OFF + g * N_COORDS
        R[lo:lo + N_COORDS, g] = coords
        R[lo:lo + N_COORDS, 3 + g] = 1.0
    R[ROT_OFF:ROT_OFF + ROT_W, 6:10] = _CQ
    return R


def _round_up(v, m):
    return (v + m - 1) // m * m


def _pick_hidden_chunk(H, target):
    """Largest 128-multiple divisor of H that is <= target (else the full H)."""
    if H <= target:
        return H
    best = None
    c = 128
    while c <= target:
        if H % c == 0:
            best = c
        c += 128
    return best if best is not None else H


# ---------------------------------------------------------------------------
# Pallas kernel factory: one row-tile of the full GSDecoder forward
# ---------------------------------------------------------------------------
def _make_kernel(D, H, CH, n_chunks, mxu_dtype, act_dtype, approx_recip):

    def kernel(x_ref, w1_ref, b1_ref, w2_ref, b2_ref, wg_ref, bg_ref, red_ref,
               out_ref):
        tm = x_ref.shape[0]
        x = x_ref[...].astype(mxu_dtype)                  # f32 HBM read, in-kernel cast

        # --- MLP, hidden dim blocked in CH-lane chunks so the (tm, 4D) f32
        #     hidden activation never materializes in VMEM ---
        def mlp_chunk(start):
            sl = pl.ds(pl.multiple_of(start, CH), CH)
            h = jnp.dot(x, w1_ref[:, sl],
                        preferred_element_type=jnp.float32) + b1_ref[:, sl]
            h = h.astype(act_dtype)
            h = h * jax.nn.sigmoid(h)                     # SiLU (bf16 on v6e/v7x)
            return jnp.dot(h.astype(mxu_dtype), w2_ref[sl, :],
                           preferred_element_type=jnp.float32)

        if n_chunks == 1:
            f = mlp_chunk(0)
        else:
            f = lax.fori_loop(
                0, n_chunks,
                lambda c, acc: acc + mlp_chunk(c * CH),
                jnp.zeros((tm, D), jnp.float32),
                unroll=(n_chunks <= 8))

        f = (f + b2_ref[...]).astype(act_dtype)
        f = f * jax.nn.sigmoid(f)                         # output SiLU

        # --- all gs heads fused into one 128-lane matmul ---
        head = jnp.dot(f.astype(mxu_dtype), wg_ref[...],
                       preferred_element_type=jnp.float32) + bg_ref[...]  # (tm,128) f32

        # --- fused xyz + rot softmax epilogue: per-group max via select, a
        #     single exp over all 128 lanes (lanes >= 96 masked to -1e30, xyz
        #     pad lane 63 has bias -1e9), one (128, 16) MXU reduction ---
        lane = lax.broadcasted_iota(jnp.int32, (1, HEAD_PAD), 1)
        m_xyz = jnp.max(head[:, XYZ_OFF:XYZ_OFF + 64], axis=-1, keepdims=True)
        m_rot = jnp.max(head[:, ROT_OFF:ROT_OFF + ROT_W], axis=-1, keepdims=True)
        shift = jnp.where(lane < ROT_OFF, m_xyz, m_rot)
        e = jnp.exp(jnp.where(lane < OP_OFF, head - shift, jnp.float32(-1e30)))
        red = jnp.dot(e, red_ref[...], preferred_element_type=jnp.float32)  # (tm,16)

        # xyz: numerators / denominators.  approx reciprocal runs on the EUP
        # (~1e-4 rel error); pass approx_recip=False for tighter fidelity.
        xyz = red[:, 0:3] * pl.reciprocal(red[:, 3:6], approx=approx_recip)

        # rot: the softmax denominator cancels in the L2 normalize (dropped).
        q = red[:, 6:10]
        qq = jnp.sum(q * q, axis=-1, keepdims=True)
        rot = q * lax.rsqrt(jnp.maximum(qq, 1e-24))       # F.normalize(eps=1e-12)

        opacity = jax.nn.sigmoid(head[:, OP_OFF:OP_OFF + 1])
        scale = 0.1 * jax.nn.softplus(head[:, SC_OFF:SC_OFF + 3])
        rgb = jax.nn.sigmoid(head[:, RGB_OFF:RGB_OFF + 3])

        out_ref[...] = jnp.concatenate(
            [xyz, opacity, scale, rot, rgb,
             jnp.zeros((tm, OUT_PAD - OUT_DIM), jnp.float32)],
            axis=-1).astype(out_ref.dtype)                # lane-dense 128-wide store

    return kernel


# ---------------------------------------------------------------------------
# one-time weight preparation (cache the result across forward calls!)
# ---------------------------------------------------------------------------
def prepare_params(params, mxu_dtype=jnp.bfloat16):
    """Packs the gs heads into the lane-aligned 128-wide layout and casts the
    MXU operands once.  Do this once per weight set, not per forward call."""
    D, H = params["w1"].shape

    wg = jnp.zeros((D, HEAD_PAD), jnp.float32)
    wg = wg.at[:, XYZ_OFF:XYZ_OFF + XYZ_W].set(params["w_xyz"])
    wg = wg.at[:, ROT_OFF:ROT_OFF + ROT_W].set(params["w_rot"])
    wg = wg.at[:, OP_OFF:OP_OFF + 1].set(params["w_op"])
    wg = wg.at[:, SC_OFF:SC_OFF + 3].set(params["w_sc"])
    wg = wg.at[:, RGB_OFF:RGB_OFF + 3].set(params["w_rgb"])

    bg = jnp.zeros((HEAD_PAD,), jnp.float32)
    bg = bg.at[XYZ_OFF:XYZ_OFF + XYZ_W].set(params["b_xyz"])
    bg = bg.at[XYZ_OFF + XYZ_W].set(-1e9)          # pad col never wins the xyz row-max
    bg = bg.at[ROT_OFF:ROT_OFF + ROT_W].set(params["b_rot"])
    bg = bg.at[OP_OFF].set(params["b_op"][0])
    bg = bg.at[SC_OFF:SC_OFF + 3].set(params["b_sc"])
    bg = bg.at[RGB_OFF:RGB_OFF + 3].set(params["b_rgb"])

    return {
        "w1": params["w1"].astype(mxu_dtype),
        "b1": params["b1"].reshape(1, H).astype(jnp.float32),
        "w2": params["w2"].astype(mxu_dtype),
        "b2": params["b2"].reshape(1, D).astype(jnp.float32),
        "wg": wg.astype(mxu_dtype),
        "bg": bg[None, :],
        "red": jnp.asarray(_combined_reduction_matrix()),
    }


# ---------------------------------------------------------------------------
# wrapper
# ---------------------------------------------------------------------------
def gsdecoder_forward(feats, prepped, *, tile_m=256, act_dtype=jnp.bfloat16,
                      hidden_chunk=512, approx_recip=True,
                      vmem_limit_bytes=None):
    """feats: (B, N, D) float32; prepped = prepare_params(params) -> (B, N, 14)."""
    B, N, D = feats.shape
    M = B * N
    mxu_dtype = prepped["w1"].dtype
    H = prepped["w1"].shape[1]
    mxu_bytes = jnp.dtype(mxu_dtype).itemsize

    # --- row tiling: big tiles amortize the ~0.35us grid-step overhead; shrink
    #     when needed so the "parallel" grid has >= 2 steps (v7x megacore). ---
    tile_m = _round_up(max(8, min(tile_m, _round_up(M, 8))), 8)
    if pl.cdiv(M, tile_m) < 2 and M > 8:
        tile_m = _round_up(pl.cdiv(M, 2), 8)
    grid_m = pl.cdiv(M, tile_m)
    M_pad = grid_m * tile_m

    x = feats.reshape(M, D)                         # stays f32; cast happens in-kernel
    if M_pad != M:
        x = jnp.pad(x, ((0, M_pad - M), (0, 0)))

    CH = _pick_hidden_chunk(H, hidden_chunk)
    n_chunks = H // CH

    # --- explicit VMEM budget: single-buffered weights + double-buffered
    #     x/out tiles + activation scratch + headroom, capped per-chip. ---
    if vmem_limit_bytes is None:
        w_bytes = (D * H + H * D + D * HEAD_PAD) * mxu_bytes \
                  + (H + D + 2 * HEAD_PAD + HEAD_PAD * RED_W) * 4
        io_bytes = 2 * tile_m * D * 4 + 2 * tile_m * OUT_PAD * 4
        act_bytes = tile_m * (2 * CH + 2 * D + 2 * HEAD_PAD + 4 * RED_W) * 4
        est = w_bytes + io_bytes + 2 * act_bytes + (8 << 20)
        try:
            cap = int(pltpu.get_tpu_info().vmem_capacity_bytes) * 85 // 100
        except Exception:
            cap = 56 << 20                           # conservative v7x-ish cap
        vmem_limit_bytes = min(max(est, 32 << 20), cap)

    kernel = _make_kernel(D, H, CH, n_chunks, mxu_dtype, act_dtype, approx_recip)

    # Resident weights: constant index_map + single pipeline buffer.
    # TODO(synk): at very large D on v7x (bf16 MLP weights > ~48 MiB), keep
    # w1/w2 in HBM (memory_space=pl.ANY) and stream H-chunks with emit_pipeline.
    def resident(shape):
        return pl.BlockSpec(shape, lambda i, _n=len(shape): (0,) * _n,
                            pipeline_mode=pl.Buffered(1))

    out = pl.pallas_call(
        kernel,
        out_shape=jax.ShapeDtypeStruct((M_pad, OUT_PAD), jnp.float32),
        grid_spec=pltpu.PrefetchScalarGridSpec(
            num_scalar_prefetch=0,
            grid=(grid_m,),
            in_specs=[
                pl.BlockSpec((tile_m, D), lambda i: (i, 0)),      # x rows (streamed)
                resident((D, H)), resident((1, H)),               # w1, b1
                resident((H, D)), resident((1, D)),               # w2, b2
                resident((D, HEAD_PAD)), resident((1, HEAD_PAD)),  # wg, bg
                resident((HEAD_PAD, RED_W)),                      # fused reduction mat
            ],
            out_specs=pl.BlockSpec((tile_m, OUT_PAD), lambda i: (i, 0)),
        ),
        compiler_params=pltpu.CompilerParams(
            dimension_semantics=("parallel",),
            vmem_limit_bytes=vmem_limit_bytes),
    )(x, prepped["w1"], prepped["b1"], prepped["w2"], prepped["b2"],
      prepped["wg"], prepped["bg"], prepped["red"])

    return out[:M, :OUT_DIM].reshape(B, N, OUT_DIM)


# ---------------------------------------------------------------------------
# deterministic parameter init (shapes / constants from GSDecoder.__init__)
# ---------------------------------------------------------------------------
def init_params(key, D):
    H = 4 * D
    ks = jax.random.split(key, 6)

    def lin_init(k, fan_in, fan_out):
        bound = 1.0 / np.sqrt(fan_in)
        return jax.random.uniform(k, (fan_in, fan_out), jnp.float32, -bound, bound)

    xav = np.sqrt(6.0 / (D + 3 * N_COORDS))
    return {
        "w1": lin_init(ks[0], D, H), "b1": jnp.zeros((1, H), jnp.float32),
        "w2": lin_init(ks[1], H, D), "b2": jnp.zeros((1, D), jnp.float32),
        # xyz: xavier_uniform, bias 0
        "w_xyz": jax.random.uniform(ks[2], (D, 3 * N_COORDS), jnp.float32, -xav, xav),
        "b_xyz": jnp.zeros((3 * N_COORDS,), jnp.float32),
        # opacity: default weight, bias = inverse_sigmoid(0.1)
        "w_op": lin_init(ks[3], D, 1),
        "b_op": jnp.full((1,), np.log(INIT_DENSITY / (1 - INIT_DENSITY)), jnp.float32),
        # scale: default weight, bias = -1.8
        "w_sc": lin_init(ks[4], D, 3), "b_sc": jnp.full((3,), -1.8, jnp.float32),
        # rot: default weight, bias = 0
        "w_rot": lin_init(ks[5], D, 32), "b_rot": jnp.zeros((32,), jnp.float32),
        # rgb: weight = 0, bias = 0
        "w_rgb": jnp.zeros((D, 3), jnp.float32), "b_rgb": jnp.zeros((3,), jnp.float32),
    }


# ---------------------------------------------------------------------------
# plain-JAX reference (mirrors the PyTorch forward).  mxu_dtype / act_dtype let
# us apply the same bf16 matmul-operand and SiLU casts as the kernel so the
# correctness check stays tight.  The true f32 module has a slightly larger
# deviation from the bf16 kernel (validate at production D if needed).
# ---------------------------------------------------------------------------
def reference_forward(feats, p, mxu_dtype=jnp.float32, act_dtype=jnp.float32):
    cm = lambda a: a.astype(mxu_dtype)
    dot = lambda a, b: jnp.dot(cm(a), cm(b), preferred_element_type=jnp.float32)

    def silu(v):
        v = v.astype(act_dtype)
        return (v * jax.nn.sigmoid(v)).astype(jnp.float32)

    f = silu(dot(feats, p["w1"]) + p["b1"])
    f = silu(dot(f, p["w2"]) + p["b2"])

    coords = jnp.linspace(-POS_BOUND, POS_BOUND, N_COORDS, dtype=jnp.float32)
    v = dot(f, p["w_xyz"]) + p["b_xyz"]
    prob = jax.nn.softmax(v.reshape(*v.shape[:-1], 3, N_COORDS), axis=-1)
    xyz = jnp.sum(prob * coords, axis=-1)

    opacity = jax.nn.sigmoid(dot(f, p["w_op"]) + p["b_op"])
    scale = 0.1 * jax.nn.softplus(dot(f, p["w_sc"]) + p["b_sc"])

    pr = jax.nn.softmax(dot(f, p["w_rot"]) + p["b_rot"], axis=-1)
    q = pr @ jnp.asarray(_CQ)
    rot = q / jnp.maximum(jnp.linalg.norm(q, axis=-1, keepdims=True), 1e-12)

    rgb = jax.nn.sigmoid(dot(f, p["w_rgb"]) + p["b_rgb"])
    return jnp.concatenate([xyz, opacity, scale, rot, rgb], axis=-1)


if __name__ == "__main__":
    B, N, D = 2, 8, 32          # batch, tokens, transformer_dim (small test shapes)
    key = jax.random.PRNGKey(0)
    k_feat, k_par = jax.random.split(key)

    feats = jax.random.normal(k_feat, (B, N, D), dtype=jnp.float32)
    params = init_params(k_par, D)

    # Pack / cast weights ONCE; reuse `prepped` across forward calls.
    prepped = prepare_params(params, mxu_dtype=jnp.bfloat16)

    # bf16 MXU + bf16 SiLU (v6e/v7x defaults; pass act_dtype=jnp.float32 on v5e).
    out = gsdecoder_forward(feats, prepped)
    out = jax.block_until_ready(out)
    assert out.shape == (B, N, OUT_DIM)

    # compare against a reference using the same bf16 matmul/SiLU dtypes
    ref = reference_forward(feats, params, mxu_dtype=jnp.bfloat16,
                            act_dtype=jnp.bfloat16)
    np.testing.assert_allclose(np.asarray(out), np.asarray(ref), atol=1e-2, rtol=1e-2)

    print("KERNEL_OK")
</pallas_src>

<mosaic_0001>
module attributes {stable_mosaic.version = 11 : i64} {
  func.func @kernel(%arg0: i32, %arg1: memref<8x32xf32, #tpu.memory_space<vmem>>, %arg2: memref<32x128xbf16, #tpu.memory_space<vmem>>, %arg3: memref<1x128xf32, #tpu.memory_space<vmem>>, %arg4: memref<128x32xbf16, #tpu.memory_space<vmem>>, %arg5: memref<1x32xf32, #tpu.memory_space<vmem>>, %arg6: memref<32x128xbf16, #tpu.memory_space<vmem>>, %arg7: memref<1x128xf32, #tpu.memory_space<vmem>>, %arg8: memref<128x16xf32, #tpu.memory_space<vmem>>, %arg9: memref<8x128xf32, #tpu.memory_space<vmem>>) attributes {dimension_semantics = [#tpu.dimension_semantics<parallel>], iteration_bounds = array<i64: 2>, scalar_prefetch = 0 : i64, scratch_operands = 0 : i64, tpu.core_type = #tpu.core_type<tc>, window_params = [{transform_indices = @transform_0, window_bounds = array<i64: 8, 32>}, {pipeline_mode = #tpu.pipeline_mode<synchronous>, transform_indices = @transform_1, window_bounds = array<i64: 32, 128>}, {pipeline_mode = #tpu.pipeline_mode<synchronous>, transform_indices = @transform_2, window_bounds = array<i64: 1, 128>}, {pipeline_mode = #tpu.pipeline_mode<synchronous>, transform_indices = @transform_3, window_bounds = array<i64: 128, 32>}, {pipeline_mode = #tpu.pipeline_mode<synchronous>, transform_indices = @transform_4, window_bounds = array<i64: 1, 32>}, {pipeline_mode = #tpu.pipeline_mode<synchronous>, transform_indices = @transform_5, window_bounds = array<i64: 32, 128>}, {pipeline_mode = #tpu.pipeline_mode<synchronous>, transform_indices = @transform_6, window_bounds = array<i64: 1, 128>}, {pipeline_mode = #tpu.pipeline_mode<synchronous>, transform_indices = @transform_7, window_bounds = array<i64: 128, 16>}, {transform_indices = @transform_8, window_bounds = array<i64: 8, 128>}]} {
    %c0 = arith.constant 0 : index
    %c0_0 = arith.constant 0 : index
    %0 = vector.load %arg1[%c0, %c0_0] : memref<8x32xf32, #tpu.memory_space<vmem>>, vector<8x32xf32>
    %1 = arith.truncf %0 : vector<8x32xf32> to vector<8x32xbf16>
    %c0_i32 = arith.constant 0 : i32
    %2 = tpu.assume_multiple %c0_i32, 128 : i32
    %c0_1 = arith.constant 0 : index
    %3 = arith.index_cast %2 : i32 to index
    %4 = vector.load %arg2[%c0_1, %3] : memref<32x128xbf16, #tpu.memory_space<vmem>>, vector<32x128xbf16>
    %cst = arith.constant dense<0.000000e+00> : vector<8x128xf32>
    %5 = tpu.matmul %1, %4, %cst {dimension_numbers = #tpu.dot_dimension_numbers<[1], [0], [0], [1], [0, 0, 1, 1], [], []>} : vector<8x32xbf16>, vector<32x128xbf16>, vector<8x128xf32> -> vector<8x128xf32>
    %c0_2 = arith.constant 0 : index
    %6 = arith.index_cast %2 : i32 to index
    %7 = vector.load %arg3[%c0_2, %6] : memref<1x128xf32, #tpu.memory_space<vmem>>, vector<1x128xf32>
    %8 = vector.broadcast %7 : vector<1x128xf32> to vector<8x128xf32>
    %9 = arith.addf %5, %8 : vector<8x128xf32>
    %10 = arith.truncf %9 : vector<8x128xf32> to vector<8x128xbf16>
    %11 = arith.negf %10 : vector<8x128xbf16>
    %12 = math.exp %11 : vector<8x128xbf16>
    %cst_3 = arith.constant 1.000000e+00 : bf16
    %13 = vector.broadcast %cst_3 : bf16 to vector<8x128xbf16>
    %14 = arith.addf %13, %12 : vector<8x128xbf16>
    %15 = arith.divf %13, %14 : vector<8x128xbf16>
    %16 = arith.mulf %10, %15 : vector<8x128xbf16>
    %17 = arith.index_cast %2 : i32 to index
    %c0_4 = arith.constant 0 : index
    %18 = vector.load %arg4[%17, %c0_4] : memref<128x32xbf16, #tpu.memory_space<vmem>>, vector<128x32xbf16>
    %cst_5 = arith.constant dense<0.000000e+00> : vector<8x32xf32>
    %19 = tpu.matmul %16, %18, %cst_5 {dimension_numbers = #tpu.dot_dimension_numbers<[1], [0], [0], [1], [0, 0, 1, 1], [], []>} : vector<8x128xbf16>, vector<128x32xbf16>, vector<8x32xf32> -> vector<8x32xf32>
    %c0_6 = arith.constant 0 : index
    %c0_7 = arith.constant 0 : index
    %20 = vector.load %arg5[%c0_6, %c0_7] : memref<1x32xf32, #tpu.memory_space<vmem>>, vector<1x32xf32>
    %21 = vector.broadcast %20 : vector<1x32xf32> to vector<8x32xf32>
    %22 = arith.addf %19, %21 : vector<8x32xf32>
    %23 = arith.truncf %22 : vector<8x32xf32> to vector<8x32xbf16>
    %24 = arith.negf %23 : vector<8x32xbf16>
    %25 = math.exp %24 : vector<8x32xbf16>
    %cst_8 = arith.constant 1.000000e+00 : bf16
    %26 = vector.broadcast %cst_8 : bf16 to vector<8x32xbf16>
    %27 = arith.addf %26, %25 : vector<8x32xbf16>
    %28 = arith.divf %26, %27 : vector<8x32xbf16>
    %29 = arith.mulf %23, %28 : vector<8x32xbf16>
    %c0_9 = arith.constant 0 : index
    %c0_10 = arith.constant 0 : index
    %30 = vector.load %arg6[%c0_9, %c0_10] : memref<32x128xbf16, #tpu.memory_space<vmem>>, vector<32x128xbf16>
    %cst_11 = arith.constant dense<0.000000e+00> : vector<8x128xf32>
    %31 = tpu.matmul %29, %30, %cst_11 {dimension_numbers = #tpu.dot_dimension_numbers<[1], [0], [0], [1], [0, 0, 1, 1], [], []>} : vector<8x32xbf16>, vector<32x128xbf16>, vector<8x128xf32> -> vector<8x128xf32>
    %c0_12 = arith.constant 0 : index
    %c0_13 = arith.constant 0 : index
    %32 = vector.load %arg7[%c0_12, %c0_13] : memref<1x128xf32, #tpu.memory_space<vmem>>, vector<1x128xf32>
    %33 = vector.broadcast %32 : vector<1x128xf32> to vector<8x128xf32>
    %34 = arith.addf %31, %33 : vector<8x128xf32>
    %35 = tpu.iota {dimensions = array<i32: 1>} : vector<1x128xi32>
    %36 = vector.extract_strided_slice %34 {offsets = [0, 0], sizes = [8, 64], strides = [1, 1]} : vector<8x128xf32> to vector<8x64xf32>
    %cst_14 = arith.constant dense<0xFF800000> : vector<8xf32>
    %37 = vector.multi_reduction <maximumf>, %36, %cst_14 [1] : vector<8x64xf32> to vector<8xf32>
    %38 = vector.shape_cast %37 : vector<8xf32> to vector<8x1xf32>
    %39 = vector.extract_strided_slice %34 {offsets = [0, 64], sizes = [8, 32], strides = [1, 1]} : vector<8x128xf32> to vector<8x32xf32>
    %cst_15 = arith.constant dense<0xFF800000> : vector<8xf32>
    %40 = vector.multi_reduction <maximumf>, %39, %cst_15 [1] : vector<8x32xf32> to vector<8xf32>
    %41 = vector.shape_cast %40 : vector<8xf32> to vector<8x1xf32>
    %c64_i32 = arith.constant 64 : i32
    %42 = vector.broadcast %c64_i32 : i32 to vector<1x128xi32>
    %43 = arith.cmpi slt, %35, %42 : vector<1x128xi32>
    %44 = vector.shape_cast %43 : vector<1x128xi1> to vector<1x128xi1>
    %45 = vector.broadcast %44 : vector<1x128xi1> to vector<8x128xi1>
    %46 = vector.shape_cast %38 : vector<8x1xf32> to vector<8x1xf32>
    %47 = vector.broadcast %46 : vector<8x1xf32> to vector<8x128xf32>
    %48 = vector.shape_cast %41 : vector<8x1xf32> to vector<8x1xf32>
    %49 = vector.broadcast %48 : vector<8x1xf32> to vector<8x128xf32>
    %50 = arith.select %45, %47, %49 : vector<8x128xi1>, vector<8x128xf32>
    %c96_i32 = arith.constant 96 : i32
    %51 = vector.broadcast %c96_i32 : i32 to vector<1x128xi32>
    %52 = arith.cmpi slt, %35, %51 : vector<1x128xi32>
    %53 = arith.subf %34, %50 : vector<8x128xf32>
    %cst_16 = arith.constant -1.000000e+30 : f32
    %54 = vector.shape_cast %52 : vector<1x128xi1> to vector<1x128xi1>
    %55 = vector.broadcast %54 : vector<1x128xi1> to vector<8x128xi1>
    %56 = vector.broadcast %cst_16 : f32 to vector<8x128xf32>
    %57 = arith.select %55, %53, %56 : vector<8x128xi1>, vector<8x128xf32>
    %58 = math.exp %57 : vector<8x128xf32>
    %c0_17 = arith.constant 0 : index
    %c0_18 = arith.constant 0 : index
    %59 = vector.load %arg8[%c0_17, %c0_18] : memref<128x16xf32, #tpu.memory_space<vmem>>, vector<128x16xf32>
    %cst_19 = arith.constant dense<0.000000e+00> : vector<8x16xf32>
    %60 = tpu.matmul %58, %59, %cst_19 {dimension_numbers = #tpu.dot_dimension_numbers<[1], [0], [0], [1], [0, 0, 1, 1], [], []>} : vector<8x128xf32>, vector<128x16xf32>, vector<8x16xf32> -> vector<8x16xf32>
    %61 = vector.extract_strided_slice %60 {offsets = [0, 0], sizes = [8, 3], strides = [1, 1]} : vector<8x16xf32> to vector<8x3xf32>
    %62 = vector.extract_strided_slice %60 {offsets = [0, 3], sizes = [8, 3], strides = [1, 1]} : vector<8x16xf32> to vector<8x3xf32>
    %63 = tpu.reciprocal %62 {approx = true} : vector<8x3xf32> -> vector<8x3xf32>
    %64 = arith.mulf %61, %63 : vector<8x3xf32>
    %65 = vector.extract_strided_slice %60 {offsets = [0, 6], sizes = [8, 4], strides = [1, 1]} : vector<8x16xf32> to vector<8x4xf32>
    %66 = arith.mulf %65, %65 : vector<8x4xf32>
    %cst_20 = arith.constant dense<0.000000e+00> : vector<8xf32>
    %67 = vector.multi_reduction <add>, %66, %cst_20 [1] : vector<8x4xf32> to vector<8xf32>
    %68 = vector.shape_cast %67 : vector<8xf32> to vector<8x1xf32>
    %cst_21 = arith.constant 1.000000e-24 : f32
    %69 = vector.broadcast %cst_21 : f32 to vector<8x1xf32>
    %70 = arith.maximumf %68, %69 : vector<8x1xf32>
    %71 = math.rsqrt %70 : vector<8x1xf32>
    %72 = vector.broadcast %71 : vector<8x1xf32> to vector<8x4xf32>
    %73 = arith.mulf %65, %72 : vector<8x4xf32>
    %74 = vector.extract_strided_slice %34 {offsets = [0, 96], sizes = [8, 1], strides = [1, 1]} : vector<8x128xf32> to vector<8x1xf32>
    %75 = arith.negf %74 : vector<8x1xf32>
    %76 = math.exp %75 : vector<8x1xf32>
    %cst_22 = arith.constant 1.000000e+00 : f32
    %77 = vector.broadcast %cst_22 : f32 to vector<8x1xf32>
    %78 = arith.addf %77, %76 : vector<8x1xf32>
    %79 = arith.divf %77, %78 : vector<8x1xf32>
    %80 = vector.extract_strided_slice %34 {offsets = [0, 97], sizes = [8, 3], strides = [1, 1]} : vector<8x128xf32> to vector<8x3xf32>
    %cst_23 = arith.constant 0.000000e+00 : f32
    %81 = vector.broadcast %cst_23 : f32 to vector<8x3xf32>
    %82 = arith.maximumf %80, %81 : vector<8x3xf32>
    %83 = vector.broadcast %cst_23 : f32 to vector<8x3xf32>
    %84 = arith.subf %80, %83 : vector<8x3xf32>
    %85 = arith.cmpf one, %84, %84 : vector<8x3xf32>
    %86 = vector.broadcast %cst_23 : f32 to vector<8x3xf32>
    %87 = arith.addf %80, %86 : vector<8x3xf32>
    %88 = math.absf %84 : vector<8x3xf32>
    %cst_24 = arith.constant 0.000000e+00 : f32
    %89 = vector.broadcast %cst_24 : f32 to vector<8x3xf32>
    %90 = arith.subf %89, %88 : vector<8x3xf32>
    %91 = math.exp %90 : vector<8x3xf32>
    %92 = math.log1p %91 : vector<8x3xf32>
    %93 = arith.addf %82, %92 : vector<8x3xf32>
    %94 = arith.select %85, %87, %93 : vector<8x3xi1>, vector<8x3xf32>
    %cst_25 = arith.constant 1.000000e-01 : f32
    %95 = vector.broadcast %cst_25 : f32 to vector<8x3xf32>
    %96 = arith.mulf %95, %94 : vector<8x3xf32>
    %97 = vector.extract_strided_slice %34 {offsets = [0, 100], sizes = [8, 3], strides = [1, 1]} : vector<8x128xf32> to vector<8x3xf32>
    %98 = arith.negf %97 : vector<8x3xf32>
    %99 = math.exp %98 : vector<8x3xf32>
    %cst_26 = arith.constant 1.000000e+00 : f32
    %100 = vector.broadcast %cst_26 : f32 to vector<8x3xf32>
    %101 = arith.addf %100, %99 : vector<8x3xf32>
    %102 = arith.divf %100, %101 : vector<8x3xf32>
    %cst_27 = arith.constant 0.000000e+00 : f32
    %103 = vector.broadcast %cst_27 : f32 to vector<8x114xf32>
    %104 = tpu.concatenate %64, %79, %96, %73, %102, %103 in 1 : vector<8x3xf32>, vector<8x1xf32>, vector<8x3xf32>, vector<8x4xf32>, vector<8x3xf32>, vector<8x114xf32> -> vector<8x128xf32>
    %c0_28 = arith.constant 0 : index
    %c0_29 = arith.constant 0 : index
    %105 = vector.load %arg9[%c0_28, %c0_29] : memref<8x128xf32, #tpu.memory_space<vmem>>, vector<8x128xf32>
    tpu.vector_store %arg9[%c0_28, %c0_29], %104 {strides = array<i32>} : memref<8x128xf32, #tpu.memory_space<vmem>>, vector<8x128xf32>,
    return
  }
  func.func @transform_0(%arg0: i32) -> (i32, i32) {
    %c0_i32 = arith.constant 0 : i32
    %c0_i32_0 = arith.constant 0 : i32
    return %arg0, %c0_i32 : i32, i32
  }
  func.func @transform_1(%arg0: i32) -> (i32, i32) {
    %c0_i32 = arith.constant 0 : i32
    %c0_i32_0 = arith.constant 0 : i32
    %c0_i32_1 = arith.constant 0 : i32
    return %c0_i32, %c0_i32_0 : i32, i32
  }
  func.func @transform_2(%arg0: i32) -> (i32, i32) {
    %c0_i32 = arith.constant 0 : i32
    %c0_i32_0 = arith.constant 0 : i32
    %c0_i32_1 = arith.constant 0 : i32
    return %c0_i32, %c0_i32_0 : i32, i32
  }
  func.func @transform_3(%arg0: i32) -> (i32, i32) {
    %c0_i32 = arith.constant 0 : i32
    %c0_i32_0 = arith.constant 0 : i32
    %c0_i32_1 = arith.constant 0 : i32
    return %c0_i32, %c0_i32_0 : i32, i32
  }
  func.func @transform_4(%arg0: i32) -> (i32, i32) {
    %c0_i32 = arith.constant 0 : i32
    %c0_i32_0 = arith.constant 0 : i32
    %c0_i32_1 = arith.constant 0 : i32
    return %c0_i32, %c0_i32_0 : i32, i32
  }
  func.func @transform_5(%arg0: i32) -> (i32, i32) {
    %c0_i32 = arith.constant 0 : i32
    %c0_i32_0 = arith.constant 0 : i32
    %c0_i32_1 = arith.constant 0 : i32
    return %c0_i32, %c0_i32_0 : i32, i32
  }
  func.func @transform_6(%arg0: i32) -> (i32, i32) {
    %c0_i32 = arith.constant 0 : i32
    %c0_i32_0 = arith.constant 0 : i32
    %c0_i32_1 = arith.constant 0 : i32
    return %c0_i32, %c0_i32_0 : i32, i32
  }
  func.func @transform_7(%arg0: i32) -> (i32, i32) {
    %c0_i32 = arith.constant 0 : i32
    %c0_i32_0 = arith.constant 0 : i32
    %c0_i32_1 = arith.constant 0 : i32
    return %c0_i32, %c0_i32_0 : i32, i32
  }
  func.func @transform_8(%arg0: i32) -> (i32, i32) {
    %c0_i32 = arith.constant 0 : i32
    %c0_i32_0 = arith.constant 0 : i32
    return %arg0, %c0_i32 : i32, i32
  }
}

</mosaic_0001>

<bundles_post_ra>
// kernel: tpu_custom_call.1
= control target key start
LH: loop header
LB: loop body
LE: loop exit
PB: predicated region body
PF: predicated region fallthrough
CT: control target
= control target key end

     0   :  { %13 = vsyncpa [#allocation3], 0  ;;  %s1397_s0 = inlined_call_operand.vmem [shape: f32[16,32], index: 0, kind: input, shape index: {}]   ;;  %s1398_s1 = inlined_call_operand.vmem [shape: bf16[32,128], index: 1, kind: input, shape index: {}]   ;;  %s1399_s2 = inlined_call_operand.vmem [shape: f32[1,128], index: 2, kind: input, shape index: {}]   ;;  %s1400_s3 = inlined_call_operand.vmem [shape: bf16[128,32], index: 3, kind: input, shape index: {}]   ;;  %s1401_s4 = inlined_call_operand.vmem [shape: f32[1,32], index: 4, kind: input, shape index: {}]   ;;  %s1402_s5 = inlined_call_operand.vmem [shape: bf16[32,128], index: 5, kind: input, shape index: {}]   ;;  %s1403_s6 = inlined_call_operand.vmem [shape: f32[1,128], index: 6, kind: input, shape index: {}]   ;;  %s1404_s7 = inlined_call_operand.vmem [shape: f32[128,16], index: 7, kind: input, shape index: {}]   ;;  %s1405_s8 = inlined_call_operand.hbm [shape: f32[16,128], index: 8, kind: output, shape index: {}]  }
   0x1   :  { %15 = vsyncpa [#allocation3 + $0x1], 0  ;;  %s1171_s27 = smov 0   ;;  %s1173_s28 = smov 0  }
   0x2   :  { %s1175_s29 = smov 0   ;;  %s1177_s30 = smov 0  }
   0x3 LB: > { %s1192_s9 = sadd.s32 4294967295, %s1115_s30   ;;  %s815_s10 = sadd.s32 4294967294, %s1115_s30   ;;  %s1115_s30 = sphi %s1177_s30, %s1411_s30   ;;  %s1111_s29 = sphi %s1175_s29, %s1410_s29   ;;  %s1107_s28 = sphi %s1173_s28, %s1409_s28   ;;  %s1103_s27 = sphi %s1171_s27, %s1408_s27  }
   0x4   : > { %s1196_s11 = sadd.s32 1, %s1115_s30   ;;  %s201_s12 = sadd.s32 1, %s1111_s29 }
   0x5   : > { %s198_s13 = ssub.s32 %s1115_s30, %s1196_s11  ;;  %p211_p0 = scmp.ne.s32.totalorder %s1111_s29, %s1107_s28 }
   0x6   : > { %p199_p1 = scmp.eq.s32.totalorder %s198_s13, 0  ;;  %p212_p2 = scmp.eq.s32.totalorder %s1192_s9, 1 }
   0x7   : > { %p217_p3 = scmp.ne.s32.totalorder %s1107_s28, %s1103_s27  ;;  %p218_p4 = scmp.eq.s32.totalorder %s815_s10, 1 }
   0x8   : > { %s1207_s14 = scalar_select %p199_p1, %s1111_s29, %s201_s12  }
   0x9   : > { %p1209_p5 = por %p212_p2, %p211_p0  ;;  %p1213_p6 = por %p218_p4, %p217_p3 }
   0xa   : > { %p818_p7 = scmp.ge.s32.totalorder %s1115_s30, 1  ;;  %p264_p8 = scmp.lt.s32.totalorder %s1115_s30, 3 }
   0xc   : > { %p265_p9 = pnand %p818_p7, %p264_p8 }
   0xd   : > { %v1019_v0 = vld [vmem:[%s1398_s1] sm:$0xff] (!%p265_p9)   ;;  %v1117_v1 = vmov (!%p265_p9), 0.0   ;;  %v1020_v2 = vld [vmem:[%s1398_s1 + $0x8] sm:$0xff] (!%p265_p9)   ;;  %vm1118_vm0 = vmmov (!%p265_p9), 0   ;;  %p297_p10 = scmp.lt.s32.totalorder (!%p265_p9), %s1192_s9, 1  ;;  %vm328_vm1 = vcmask (!%p265_p9), 261120  }
   0xe   : > { %268 = sbr.rel (%p265_p9) target bundleno = 1521 (0x5f1), region = 52  ;;  %877 = vmatprep.subr.bf16.mxu1 (!%p265_p9), %v1117_v1  ;;  %905 = vmatprep.subr.bf16.mxu0 (!%p265_p9), %v1117_v1  ;;  %v1021_v5 = vld [vmem:[%s1400_s3] sm:$0xff] (!%p265_p9)   ;;  %v1022_v6 = vld [vmem:[%s1400_s3 + $0x8] sm:$0xff] (!%p265_p9)   ;;  %v1023_v7 = vld [vmem:[%s1400_s3 + $0x10] sm:$0xff] (!%p265_p9)   ;;  %v1119_v44 = vmov (!%p265_p9), 0.0|0.0   ;;  %vm569_vm2 = vcmask (!%p265_p9), 523264  }
   0xf   : > { %878 = vmatpush3.bf16.msra.mxu1 (!%p265_p9), %v1019_v0  ;;  %881 = vmatprep.mubr.msk.bf16.mxu1 (!%p265_p9), %vm1118_vm0, %v1117_v1  ;;  %v1024_v8 = vld [vmem:[%s1400_s3 + $0x18] sm:$0xff] (!%p265_p9)   ;;  %v1025_v9 = vld [vmem:[%s1400_s3 + $0x20] sm:$0xff] (!%p265_p9)   ;;  %v1026_v10 = vld [vmem:[%s1400_s3 + $0x28] sm:$0xff] (!%p265_p9)   ;;  %vm573_vm3 = vcmask (!%p265_p9), 785920   ;;  %s1120_s19 = smov (!%p265_p9), 122   ;;  %s1121_s20 = smov (!%p265_p9), 125  }
  0x10   : > { %879 = vmatprep.subr.bf16.mxu1 (!%p265_p9), %v1117_v1  ;;  %909 = vmatprep.mubr.msk.bf16.mxu0 (!%p265_p9), %vm1118_vm0, %v1117_v1  ;;  %v1027_v11 = vld [vmem:[%s1400_s3 + $0x30] sm:$0xff] (!%p265_p9)   ;;  %v1028_v12 = vld [vmem:[%s1400_s3 + $0x38] sm:$0xff] (!%p265_p9)   ;;  %v821_v13 = vld [vmem:[%s1399_s2] ss:$0 sm:$0xff] (!%p265_p9)  ;;  %vm685_vm8 = vcmask (!%p265_p9), 31744   ;;  %vm732_vm9 = vcmask (!%p265_p9), 23552  }
  0x11   : > { %v1029_v26 = vld [vmem:[%s1402_s5] sm:$0xff] (!%p265_p9)   ;;  %v1030_v27 = vld [vmem:[%s1402_s5 + $0x8] sm:$0xff] (!%p265_p9)   ;;  %v590_v43 = vld [vmem:[%s1404_s7 + $0x10] sm:$0xff] (!%p265_p9)  ;;  %s1124_s23 = smov (!%p265_p9), 1   ;;  %s294_s24 = sand.u32 (!%p265_p9), 1, %s1107_s28   ;;  %vm735_vm10 = vcmask (!%p265_p9), 56320  }
  0x12   : > { %906 = vmatpush3.bf16.msra.mxu0 (!%p265_p9), %v1029_v26  ;;  %v826_v28 = vld [vmem:[%s1401_s4] ss:$0 sm:$0xff] (!%p265_p9)  ;;  %v589_v42 = vld [vmem:[%s1404_s7 + $0x8] sm:$0xff] (!%p265_p9)  ;;  %v591_v46 = vld [vmem:[%s1404_s7 + $0x18] sm:$0xff] (!%p265_p9)  ;;  %vm737_vm11 = vcmask (!%p265_p9), 89088   ;;  %s842_s26 = sshll.u32 (!%p265_p9), %s1192_s9, 7 }
  0x13   : > { %880 = vmatpush3.bf16.msra.mxu1 (!%p265_p9), %v1020_v2  ;;  %907 = vmatprep.subr.bf16.mxu0 (!%p265_p9), %v1117_v1  ;;  %v588_v41 = vld [vmem:[%s1404_s7] sm:$0xff] (!%p265_p9)  ;;  %v952_v47 = vpack.c.bf16 (!%p265_p9), %v591_v46, %v590_v43  ;;  %v593_v49 = vld [vmem:[%s1404_s7 + $0x28] sm:$0xff] (!%p265_p9)  ;;  %v594_v59 = vld [vmem:[%s1404_s7 + $0x30] sm:$0xff] (!%p265_p9)  ;;  %vm739_vm12 = vcmask (!%p265_p9), 113664   ;;  %s1355_s18 = scalar_lea.hbm (!%p265_p9), %s1405_s8, %s842_s26 }
  0x14   : > { %885 = vmatprep.subr.bf16.mxu1 (!%p265_p9), %v1117_v1  ;;  %v949_v45 = vpack.c.bf16 (!%p265_p9), %v589_v42, %v588_v41  ;;  %v592_v48 = vld [vmem:[%s1404_s7 + $0x20] sm:$0xff] (!%p265_p9)  ;;  %v595_v60 = vld [vmem:[%s1404_s7 + $0x38] sm:$0xff] (!%p265_p9)  ;;  %v597_v63 = vld [vmem:[%s1404_s7 + $0x48] sm:$0xff] (!%p265_p9) }
  0x15   : > { %s298_s21 = scalar_select %p297_p10, %s1192_s9, 1  ;;  %v955_v50 = vpack.c.bf16 %v593_v49, %v592_v48  ;;  %v836_v51 = vld [vmem:[%s1403_s6] ss:$0 sm:$0xff]  ;;  %v958_v61 = vpack.c.bf16 %v595_v60, %v594_v59  ;;  %v599_v2 = vld [vmem:[%s1404_s7 + $0x58] sm:$0xff] }
  0x16   : > { %908 = vmatpush3.bf16.msra.mxu0 %v1030_v27  ;;  %v596_v62 = vld [vmem:[%s1404_s7 + $0x40] sm:$0xff]  ;;  %s743_s9 = scalar_lea.sflag [#allocation3], %s294_s24 }
  0x17   : > { %s820_s22 = sshll.u32 %s298_s21, 3  ;;  %948 = vmatprep.subr.bf16.mxu0 %v1119_v44  ;;  %v961_v0 = vpack.c.bf16 %v597_v63, %v596_v62  ;;  %s1122_s21 = smov 35  }
  0x18   : > { %s300_s25 = scalar_lea.vmem %s1397_s0, %s820_s22  ;;  %s1123_s22 = smov 39  }
  0x19   : > { %v303_v3 = vld [vmem:[%s300_s25] sm:$0xff]  ;;  %s819_s25 = sshll.u32 %s294_s24, 3 }
  0x1a   : > { %v304_v4 = vpack.c.bf16 %v303_v3, %v303_v3  ;;  %s296_s10 = scalar_lea.vmem [#allocation2], %s819_s25 }
  0x1b   : > { %s756_s12 = sshll.u32 %s296_s10, 4  ;;  %s1357_s12 = int_to_ptr.vmem [resolvable:$true] %s756_s12 }
  0x1c   : > { %882 = vmatmul.mubr.msk.bf16.vlgmr.msra.gmra.mrb[0].mxu1 %vm328_vm1, %v304_v4  ;;  %v600_v4 = vld [vmem:[%s1404_s7 + $0x60] sm:$0xff] }
  0x1d   : > { %901 = vmatprep.mubr.msk.bf16.mxu1 %vm1118_vm0, %v1117_v1  ;;  %886 = vmatpush3.bf16.msra.mxu1 %v1021_v5  ;;  %v601_v5 = vld [vmem:[%s1404_s7 + $0x68] sm:$0xff] }
  0x1e   : > { %887 = vmatprep.subr.bf16.mxu1 %v1117_v1 }
  0x21   : > { %888 = vmatpush3.bf16.msra.mxu1 %v1022_v6  ;;  %v967_v6 = vpack.c.bf16 %v601_v5, %v600_v4 }
  0x22   : > { %889 = vmatprep.subr.bf16.mxu1 %v1117_v1 }
  0x25   : > { %890 = vmatpush3.bf16.msra.mxu1 %v1023_v7  ;;  %v602_v7 = vld [vmem:[%s1404_s7 + $0x70] sm:$0xff] }
  0x26   : > { %891 = vmatprep.subr.bf16.mxu1 %v1117_v1 }
  0x29   : > { %892 = vmatpush3.bf16.msra.mxu1 %v1024_v8  ;;  %v603_v8 = vld [vmem:[%s1404_s7 + $0x78] sm:$0xff] }
  0x2a   : > { %893 = vmatprep.subr.bf16.mxu1 %v1117_v1 }
  0x2d   : > { %894 = vmatpush3.bf16.msra.mxu1 %v1025_v9  ;;  %v970_v9 = vpack.c.bf16 %v603_v8, %v602_v7 }
  0x2e   : > { %895 = vmatprep.subr.bf16.mxu1 %v1117_v1 }
  0x31   : > { %896 = vmatpush3.bf16.msra.mxu1 %v1026_v10  ;;  %v567_v10 = vlaneseq }
  0x32   : > { %897 = vmatprep.subr.bf16.mxu1 %v1117_v1 }
  0x35   : > { %898 = vmatpush3.bf16.msra.mxu1 %v1027_v11  ;;  %v568_v11 = vand.u32 127, %v567_v10 }
  0x36   : > { %899 = vmatprep.subr.bf16.mxu1 %v1117_v1 }
  0x37   : > { %vm577_vm4 = vcmp.lt.s32.totalorder %v568_v11, 64  ;;  %vm581_vm5 = vcmp.lt.s32.totalorder %v568_v11, 96 }
  0x39   : > { %900 = vmatpush3.bf16.msra.mxu1 %v1028_v12 }
  0xef   : > { %v366_v14 = vpop.f32.mrb[0].mxu1 }
  0xf0   : > { %v367_v15 = vadd.f32 %v821_v13, %v366_v14  ;;  %v883_v16 = vpop.f32.mrb[1].mxu1 }
  0xf1   : > { %v369_v17 = vpop.f32.mrb[2].mxu1 }
  0xf2   : > { %v372_v18 = vpack.c.bf16 %v367_v15, %v367_v15  ;;  %v884_v19 = vpop.f32.mrb[3].mxu1 }
  0xf4   : > { %v825_v20 = vmul.bf16 3216621497, %v372_v18 }
  0xf6   : > { %1031 = vpow.bf16 %v825_v20 }
 0x101   : > { %v1032_v21 = vpop.eup %1031 }
 0x102   : > { %v377_v22 = vadd.bf16 1065369472, %v1032_v21 }
 0x104   : > { %1033 = vrcp.bf16 %v377_v22 }
 0x10f   : > { %v1034_v23 = vpop.eup %1033 }
 0x110   : > { %v379_v24 = vmul.bf16 1065369472, %v1034_v23 }
 0x112   : > { %v380_v25 = vmul.bf16 %v379_v24, %v372_v18 }
 0x114   : > { %902 = vmatmul.mubr.bf16.vlgmr.msra.gmra.mrb[4].mxu1 %v380_v25 }
 0x1e7   : > { %v486_v29 = vpop.f32.mrb[4].mxu1 }
 0x1e8   : > { %v487_v30 = vadd.f32 %v826_v28, %v486_v29  ;;  %v903_v31 = vpop.f32.mrb[5].mxu1 }
 0x1e9   : > { %v489_v32 = vpop.f32.mrb[6].mxu1 }
 0x1ea   : > { %v492_v33 = vpack.c.bf16 %v487_v30, %v487_v30  ;;  %v904_v34 = vpop.f32.mrb[7].mxu1 }
 0x1ec   : > { %v835_v35 = vmul.bf16 3216621497, %v492_v33 }
 0x1ee   : > { %1035 = vpow.bf16 %v835_v35 }
 0x1f9   : > { %v1036_v36 = vpop.eup %1035 }
 0x1fa   : > { %v497_v37 = vadd.bf16 1065369472, %v1036_v36 }
 0x1fc   : > { %1037 = vrcp.bf16 %v497_v37 }
 0x207   : > { %v1038_v38 = vpop.eup %1037 }
 0x208   : > { %v499_v39 = vmul.bf16 1065369472, %v1038_v38 }
 0x20a   : > { %v500_v40 = vmul.bf16 %v499_v39, %v492_v33 }
 0x20c   : > { %910 = vmatmul.mubr.msk.bf16.vlgmr.msra.gmra.mrb[0].mxu0 %vm328_vm1, %v500_v40 }
 0x20d   : > { %945 = vmatprep.mubr.msk.f32.mxu0 %vm1118_vm0, %v1117_v1  ;;  %950 = vmatpush3.bf16.msra.mxu0 %v949_v45  ;;  %v598_v1 = vld [vmem:[%s1404_s7 + $0x50] sm:$0xff] }
 0x20e   : > { %951 = vmatprep.subr.bf16.mxu0 %v1119_v44  ;;  %v964_v3 = vpack.c.bf16 %v599_v2, %v598_v1 }
 0x211   : > { %953 = vmatpush3.bf16.msra.mxu0 %v952_v47 }
 0x212   : > { %954 = vmatprep.subr.bf16.mxu0 %v1119_v44 }
 0x215   : > { %956 = vmatpush3.bf16.msra.mxu0 %v955_v50 }
 0x216   : > { %957 = vmatprep.subr.bf16.mxu0 %v1119_v44 }
 0x219   : > { %959 = vmatpush3.bf16.msra.mxu0 %v958_v61 }
 0x21a   : > { %960 = vmatprep.subr.bf16.mxu0 %v1119_v44 }
 0x21d   : > { %962 = vmatpush3.bf16.msra.mxu0 %v961_v0 }
 0x21e   : > { %963 = vmatprep.subr.bf16.mxu0 %v1119_v44 }
 0x221   : > { %965 = vmatpush3.bf16.msra.mxu0 %v964_v3 }
 0x222   : > { %966 = vmatprep.subr.bf16.mxu0 %v1119_v44 }
 0x225   : > { %968 = vmatpush3.bf16.msra.mxu0 %v967_v6 }
 0x226   : > { %969 = vmatprep.subr.bf16.mxu0 %v1119_v44 }
 0x229   : > { %971 = vmatpush3.bf16.msra.mxu0 %v970_v9 }
 0x2df   : > { %v561_v52 = vpop.f32.mrb[0].mxu0 }
 0x2e0   : > { %v1309_v53 = vadd.f32 %v836_v51, %v561_v52  ;;  %v911_v54 = vpop.f32.mrb[1].mxu0 }
 0x2e1   : > { %v564_v55 = vpop.f32.mrb[2].mxu0 }
 0x2e2   : > { %v912_v56 = vpop.f32.mrb[3].mxu0  ;;  %v570_v57 = vsel %vm569_vm2, %v1309_v53, -inf  ;;  %v574_v58 = vsel %vm573_vm3, %v1309_v53, -inf  ;;  %v701_v19 = vand.u32 2147483647, %v1309_v53  ;;  %v698_v37 = vmax.f32 %v1309_v53, 0.0 }
 0x2e3   : > { %571 = vmax.xlane.f32.xlu0 %v570_v57  ;;  %v840_v23 = vmul.f32 -1.442695, %v1309_v53  ;;  %vm699_vm7 = vcmp.ne.f32.partialorder %v1309_v53, %v1309_v53 }
 0x2e4   : > { %v702_v20 = vsub.f32 0.0, %v701_v19 }
 0x2e6   : > { %v703_v21 = vmul.f32 1.442695, %v702_v20 }
 0x2e7   : > { %575 = vmax.xlane.f32.xlu0 %v574_v58 }
 0x370   : > { %v572_v12 = vpop.xlane.xlu0 %571 }
 0x374   : > { %v576_v13 = vpop.xlane.xlu0 %575 }
 0x375   : > { %v580_v14 = vsel %vm577_vm4, %v572_v12, %v576_v13 }
 0x376   : > { %v582_v15 = vsub.f32 %v1309_v53, %v580_v14 }
 0x378   : > { %v585_v16 = vsel %vm581_vm5, %v582_v15, -1e+30 }
 0x379   : > { %v586_v17 = vmul.f32 1.442695, %v585_v16 }
 0x37b   : > { %1039 = vpow2.f32 %v586_v17 }
 0x37c   : > { %1041 = vpow2.f32 %v703_v21 }
 0x37d   : > { %1043 = vpow2.f32 %v840_v23 }
 0x385   : > { %v1040_v18 = vpop.eup %1039 }
 0x386   : > { %946 = vmatmul.mubr.f32.vlgmr.msra.gmra.mrb[4].mxu0 %v1040_v18  ;;  %v1042_v22 = vpop.eup %1041 }
 0x387   : > { %v705_v24 = vadd.f32 1.0, %v1042_v22  ;;  %v1044_v25 = vpop.eup %1043  ;;  %v708_v26 = vmul.f32 -0.5, %v1042_v22  ;;  %v711_v33 = vand.u32 2147483647, %v1042_v22 }
 0x388   : > { %v695_v31 = vadd.f32 1.0, %v1044_v25 }
 0x389   : > { %1045 = vlog2.f32 %v705_v24  ;;  %v709_v32 = vadd.f32 1.0, %v708_v26  ;;  %vm712_vm6 = vcmp.lt.f32.partialorder %v711_v33, 0.0004427343 }
 0x38b   : > { %v710_v35 = vmul.f32 %v1042_v22, %v709_v32 }
 0x393   : > { %v1046_v28 = vpop.eup %1045 }
 0x394   : > { %v707_v34 = vmul.f32 0.6931472, %v1046_v28 }
 0x396   : > { %v713_v36 = vsel %vm712_vm6, %v710_v35, %v707_v34 }
 0x397   : > { %v714_v39 = vadd.f32 %v713_v36, %v698_v37 }
 0x399   : > { %v715_v41 = vsel %vm699_vm7, %v1309_v53, %v714_v39 }
 0x39a   : > { %v716_v42 = vmul.f32 0.1, %v715_v41 }
 0x459   : > { %v670_v27 = vpop.f32.mrb[4].mxu0 }
 0x45a   : > { %1047 = vrcp.f32 %v670_v27  ;;  %v947_v29 = vpop.f32.mrb[5].mxu0  ;;  %v680_v30 = vmul.f32 %v670_v27, %v670_v27 }
 0x45b   : > { %1049 = vrcp.f32 %v695_v31 }
 0x45c   : > { %682 = vrot.lane.b32.xlu1 %v680_v30, %s1120_s19  ;;  %s1053_s19 = scalar_lea.vmem %s1357_s12, 128 }
 0x45d   : > { %p1054_p11 = scmp.ne.s32.totalorder %s1357_s12, %s1053_s19 }
 0x45f   : > { %p1055_p12 = pnand %p1054_p11, %p1209_p5 }
 0x461   : > { %p1056_p13 = pneg %p1055_p12 }
 0x464   : > { %v1048_v38 = vpop.eup %1047 }
 0x465   : > { %676 = vrot.lane.b32.xlu0 %v1048_v38, %s1121_s20  ;;  %v1050_v40 = vpop.eup %1049  ;;  %s1125_s20 = smov [#allocation2]  }
 0x469   : > { %718 = vrot.lane.b32.xlu0 %v1050_v40, %s1122_s21 }
 0x46d   : > { %722 = vrot.lane.b32.xlu0 %v716_v42, %s1122_s21  ;;  %s1057_s21 = sshll.u32 %s1125_s20, 4  ;;  %s1058_s21 = int_to_ptr.vmem [resolvable:$false] %s1057_s21 }
 0x46e   : > { %p1060_p0 = scmp.lt.s32.totalorder %s1357_s12, %s1058_s21 }
 0x4ce   : > { %v683_v43 = vpop.permute.xlu1 %682 }
 0x4cf   : > { %v686_v44 = vsel %vm685_vm8, %v683_v43, 0.0 }
 0x4d0   : > { %687 = vadd.xlane.f32.xlu1 %v686_v44 }
 0x4d7   : > { %v677_v45 = vpop.permute.xlu0 %676 }
 0x4d8   : > { %v679_v47 = vmul.f32 %v677_v45, %v670_v27 }
 0x4db   : > { %v719_v46 = vpop.permute.xlu0 %718 }
 0x4dc   : > { %v733_v48 = vsel %vm732_vm9, %v679_v47, %v719_v46 }
 0x4df   : > { %v723_v49 = vpop.permute.xlu0 %722 }
 0x4e0   : > { %v734_v50 = vsel %vm685_vm8, %v733_v48, %v723_v49 }
 0x4e1   : > { %729 = vrot.lane.b32.xlu1 %v1050_v40, %s1123_s22  ;;  %s1059_s22 = scalar_lea.vmem %s1058_s21, 256 }
 0x4e2   : > { %p1061_p1 = scmp.lt.s32.totalorder %s1059_s22, %s1053_s19 }
 0x4e4   : > { %p1062_p2 = por %p1061_p1, %p1060_p0 }
 0x4e6   : > { %p1063_p3 = pnand %p1062_p2, %p1056_p13 }
 0x55d   : > { %v688_v51 = vpop.xlane.xlu1 %687 }
 0x55e   : > { %v689_v52 = vmax.f32 %v688_v51, 1e-24 }
 0x560   : > { %1051 = vrsqrt.f32 %v689_v52 }
 0x561   : > { %v730_v56 = vpop.permute.xlu1 %729 }
 0x56a   : > { %v1052_v53 = vpop.eup %1051 }
 0x56b   : > { %v691_v54 = vmul.f32 %v1052_v53, %v670_v27 }
 0x56d   : > { %726 = vrot.lane.b32.xlu0 %v691_v54, %s1124_s23 }
 0x5df   : > { %v727_v55 = vpop.permute.xlu0 %726 }
 0x5e0   : > { %v736_v57 = vsel %vm735_vm10, %v734_v50, %v727_v55 }
 0x5e1   : > { %v738_v58 = vsel %vm737_vm11, %v736_v57, %v730_v56 }
 0x5e2   : > { %v740_v59 = vsel %vm739_vm12, %v738_v58, 0.0 }
 0x5e3   : > { %741 = vst [vmem:[%s296_s10] sm:$0xff] %v740_v59 }
 0x5e4   : > { %1066 = shalt.err (!%p1063_p3)
}
 0x5e5   : > { %s1067_s23 = scalar_lea.hbm %s1355_s18, 128  ;;  %s1071_s26 = scalar_lea.hbm %s1405_s8, 256 }
 0x5e6   : > { %p1068_p4 = scmp.ne.s32.totalorder %s1355_s18, %s1067_s23  ;;  %p1072_p9 = scmp.lt.u32.totalorder %s1355_s18, %s1405_s8 }
 0x5e7   : > { %p1073_p10 = scmp.lt.u32.totalorder %s1071_s26, %s1067_s23  ;;  %p1075_p12 = scmp.lt.u32.totalorder %s1067_s23, %s1355_s18 }
 0x5e8   : > { %p1069_p7 = pnand %p1068_p4, %p1209_p5 }
 0x5e9   : > { %p1074_p11 = por %p1073_p10, %p1072_p9 }
 0x5ea   : > { %p1070_p8 = pneg %p1069_p7 }
 0x5eb   : > { %p1076_p13 = por %p1075_p12, %p1074_p11 }
 0x5ed   : > { %p1077_p0 = pnand %p1076_p13, %p1070_p8 }
 0x5ef   : > { %1080 = shalt.err (!%p1077_p0)
}
 0x5f0   : > { %972 = dma.vmem_to_hbm [thread:$0]  (%p1209_p5), %s1357_s12, 128, %s1355_s18, %s743_s9  }
 0x5f1 PF: > { %p978_p1 = scmp.ge.s32.totalorder %s1115_s30, 2  ;;  %s768_s17 = sand.u32 1, %s1103_s27  }
 0x5f2   : > { %s769_s19 = scalar_lea.sflag [#allocation3], %s768_s17 }
 0x5f3   : > { %p975_p2 = pnand %p978_p1, %p1213_p6 }
 0x5f5   : > { %1098 = dma.done.wait (!%p975_p2), %s769_s19, 128  }
 0x5f6   : > { %1100 = vsyncadd (!%p975_p2), %s769_s19, 4294967168  ;;  %p18_p3 = scmp.ge.s32.totalorder %s1196_s11, 4   ;;  %s1408_s27 = smov %s1107_s28 }
 0x5f7   : > { %s1409_s28 = smov %s1111_s29  ;;  %s1410_s29 = smov %s1207_s14 }
 0x5f8   : > { %s1411_s30 = smov %s1196_s11  ;;  %20 = sbr.rel (!%p18_p3) target bundleno = 3 (0x3), region = 87 }
 0x5ff   :  { %774 = vsyncpa [#allocation3], 1 }
 0x600   :  { %776 = vsyncpa [#allocation3 + $0x1], 1 }

</bundles_post_ra>
